<compile_context>
chip_gen: v7x
topology: tpu7x:2x2x1
jax: 0.10.0
libtpu: 0.0.40
codegen_flags: <defaults>
</compile_context>

<pallas_src>
import math
import functools

import jax
import jax.numpy as jnp
from jax import lax
from jax.experimental import pallas as pl
from jax.experimental.pallas import tpu as pltpu

_INV_SQRT2 = 0.7071067811865476
_SQRT_2_OVER_PI = 0.7978845608028654


def _gelu_tanh(x):
    # tanh-approx GELU: routes the transcendental to the EUP slot; only a few
    # VALU mults remain.  Max deviation from exact erf-GELU ~1e-3.
    return 0.5 * x * (1.0 + jnp.tanh(_SQRT_2_OVER_PI * (x + 0.044715 * (x * x * x))))


def _gelu_exact(x):
    # Exact GELU (matches torch.nn.GELU default approximate='none').
    return 0.5 * x * (1.0 + lax.erf(x * _INV_SQRT2))


def mlp_kernel(x_ref, w1_ref, b1_ref, w2_ref, b2_ref, o_ref, acc_ref, *,
               use_tanh_gelu: bool):
    # grid = (row tiles [parallel], H chunks [arbitrary, innermost])
    # x_ref:  (tm, C)   row tile of flattened input (bf16)
    # w1_ref: (C, hk)   column chunk of c_fc weight (bf16)
    # b1_ref: (1, hk)   chunk of c_fc bias (f32)
    # w2_ref: (hk, C)   row chunk of c_proj weight (bf16)
    # b2_ref: (1, C)    c_proj bias (f32)
    # o_ref:  (tm, C)   output row tile
    # acc_ref:(tm, C)   f32 accumulator scratch (resident across H chunks)
    k = pl.program_id(1)

    @pl.when(k == 0)
    def _():
        acc_ref[...] = jnp.zeros_like(acc_ref)

    h = jnp.dot(x_ref[...], w1_ref[...], preferred_element_type=jnp.float32)
    h = h + b1_ref[...]
    h = _gelu_tanh(h) if use_tanh_gelu else _gelu_exact(h)
    acc_ref[...] += jnp.dot(h.astype(w2_ref.dtype), w2_ref[...],
                            preferred_element_type=jnp.float32)

    @pl.when(k == pl.num_programs(1) - 1)
    def _():
        # TODO(synk): dropout is identity in eval mode; training-mode dropout
        # would mask here with pltpu.prng_seed / pltpu.prng_random_bits.
        o_ref[...] = (acc_ref[...] + b2_ref[...]).astype(o_ref.dtype)


def _vmem_capacity_bytes():
    """Physical VMEM of the current TPU generation (conservative fallback)."""
    try:
        info = pltpu.get_tpu_info()
        for attr in ("vmem_capacity_bytes", "vmem_bytes", "vmem_size_bytes"):
            v = getattr(info, attr, None)
            if v:
                return int(v)
    except Exception:
        pass
    return 64 << 20  # v7x physical size: safe lower bound everywhere


def _choose_tiles(M, C, H, itm, out_itm, budget):
    """Pick (tm, hk) so that all double-buffered blocks + scratch fit `budget`."""

    def need(tm, hk):
        return (2 * tm * C * itm            # x tiles (double-buffered)
                + 2 * 2 * C * hk * itm      # W1 + W2 chunks (double-buffered)
                + 2 * (hk + C) * 4          # bias chunks (f32, double-buffered)
                + 2 * tm * C * out_itm      # output tiles (double-buffered)
                + tm * C * 4                # f32 accumulator scratch
                + tm * hk * (4 + itm))      # f32 GELU intermediate + bf16 copy

    # Row-tile candidates, largest first; keep >=2 row tiles when M allows so
    # both v7x TensorCores get work on the "parallel" axis.
    if M <= 256:
        tm_opts = [M]
    else:
        tm_opts = [t for t in (1024, 512, 256, 128) if 2 * t <= M] or [256]

    # Hidden-chunk candidates: H itself (fully resident), else divisors of H
    # that are multiples of 128, largest first (hk must divide H exactly).
    hk_opts = []
    d = (min(H, 8192) // 128) * 128
    while d >= 128:
        if H % d == 0 and d != H:
            hk_opts.append(d)
        d -= 128

    # 1) Prefer fully-resident weights (hk == H): the weight block index is then
    #    constant across the grid, so Pallas fetches W1/W2 once instead of
    #    re-streaming them per row tile.  Within that, take the largest tm.
    for tm in tm_opts:
        if need(tm, H) <= budget:
            return tm, H
    # 2) Otherwise maximize tm (weight-stream intensity ~ tm), then the largest
    #    H-dividing chunk that fits.
    for tm in tm_opts:
        for hk in hk_opts:
            if need(tm, hk) <= budget:
                return tm, hk
    # Fallback: smallest candidates (compiler may still shrink windows).
    return tm_opts[-1], (hk_opts[-1] if hk_opts else H)


def mlp_forward(x, w1, b1, w2, b2, *, use_tanh_gelu=True, out_dtype=None):
    """x: (B, T, C). Weights stored (in_features, out_features); pass them
    pre-cast to bfloat16 to avoid an extra HBM cast pass per call."""
    B, T, C = x.shape
    H = w1.shape[1]
    M = B * T

    compute_dtype = jnp.bfloat16
    out_dtype = x.dtype if out_dtype is None else out_dtype

    x2 = x.reshape(M, C)
    if x2.dtype != compute_dtype:
        x2 = x2.astype(compute_dtype)
    w1c = w1 if w1.dtype == compute_dtype else w1.astype(compute_dtype)
    w2c = w2 if w2.dtype == compute_dtype else w2.astype(compute_dtype)
    b1_2d = b1.reshape(1, H).astype(jnp.float32)
    b2_2d = b2.reshape(1, C).astype(jnp.float32)

    # ---- generation-aware tile sizing ----
    cap = _vmem_capacity_bytes()
    # leave >=8 MiB headroom for Mosaic internal scratch; cap at 85% of physical
    budget = min(cap - (8 << 20), int(0.85 * cap))
    itm = jnp.dtype(compute_dtype).itemsize
    out_itm = jnp.dtype(out_dtype).itemsize
    tm, hk = _choose_tiles(M, C, H, itm, out_itm, budget)

    grid = (pl.cdiv(M, tm), H // hk)   # hk divides H exactly by construction

    kernel = functools.partial(mlp_kernel, use_tanh_gelu=use_tanh_gelu)

    out = pl.pallas_call(
        kernel,
        out_shape=jax.ShapeDtypeStruct((M, C), out_dtype),
        grid_spec=pltpu.PrefetchScalarGridSpec(
            num_scalar_prefetch=0,
            grid=grid,
            in_specs=[
                pl.BlockSpec((tm, C), lambda i, k: (i, 0)),   # x rows
                pl.BlockSpec((C, hk), lambda i, k: (0, k)),   # W1 column chunk
                pl.BlockSpec((1, hk), lambda i, k: (0, k)),   # b1 chunk
                pl.BlockSpec((hk, C), lambda i, k: (k, 0)),   # W2 row chunk
                pl.BlockSpec((1, C), lambda i, k: (0, 0)),    # b2
            ],
            out_specs=pl.BlockSpec((tm, C), lambda i, k: (i, 0)),
            scratch_shapes=[pltpu.VMEM((tm, C), jnp.float32)],
        ),
        compiler_params=pltpu.CompilerParams(
            dimension_semantics=("parallel", "arbitrary"),
            vmem_limit_bytes=int(budget),
        ),
    )(x2, w1c, b1_2d, w2c, b2_2d)
    return out.reshape(B, T, C)


def init_params(key, n_embd):
    """Deterministic parameter init mimicking nn.Linear default (uniform)."""
    hidden = 4 * n_embd
    k1, k2, k3, k4 = jax.random.split(key, 4)
    bound1 = 1.0 / math.sqrt(n_embd)
    bound2 = 1.0 / math.sqrt(hidden)
    # stored as (in_features, out_features) so kernel does x @ W
    w1 = jax.random.uniform(k1, (n_embd, hidden), jnp.float32, -bound1, bound1)
    b1 = jax.random.uniform(k2, (hidden,), jnp.float32, -bound1, bound1)
    w2 = jax.random.uniform(k3, (hidden, n_embd), jnp.float32, -bound2, bound2)
    b2 = jax.random.uniform(k4, (n_embd,), jnp.float32, -bound2, bound2)
    return w1, b1, w2, b2


if __name__ == "__main__":
    B, T, n_embd = 2, 8, 32          # hidden = 4 * n_embd = 128
    key = jax.random.PRNGKey(0)
    kx, kp = jax.random.split(key)
    x = jax.random.normal(kx, (B, T, n_embd), jnp.float32)
    w1, b1, w2, b2 = init_params(kp, n_embd)

    # cast weights to bf16 once (outside the per-call path)
    w1_bf16 = w1.astype(jnp.bfloat16)
    w2_bf16 = w2.astype(jnp.bfloat16)

    y = mlp_forward(x, w1_bf16, b1, w2_bf16, b2)
    y = jax.block_until_ready(y)

    # sanity check against a pure-JAX f32 reference of the same forward pass
    # (exact erf GELU, f32 weights) -- bf16 matmul inputs + tanh-GELU approx
    # -> relaxed tolerance.
    h_ref = x.reshape(-1, n_embd) @ w1 + b1
    h_ref = 0.5 * h_ref * (1.0 + lax.erf(h_ref * _INV_SQRT2))
    y_ref = (h_ref @ w2 + b2).reshape(B, T, n_embd)
    assert y.shape == y_ref.shape
    assert jnp.allclose(y, y_ref, atol=3e-2, rtol=3e-2), "mismatch vs reference"

    print("KERNEL_OK")
</pallas_src>

<mosaic_0001>
module attributes {stable_mosaic.version = 11 : i64} {
  func.func @mlp_kernel(%arg0: i32, %arg1: i32, %arg2: memref<16x32xbf16, #tpu.memory_space<vmem>>, %arg3: memref<32x128xbf16, #tpu.memory_space<vmem>>, %arg4: memref<1x128xf32, #tpu.memory_space<vmem>>, %arg5: memref<128x32xbf16, #tpu.memory_space<vmem>>, %arg6: memref<1x32xf32, #tpu.memory_space<vmem>>, %arg7: memref<16x32xf32, #tpu.memory_space<vmem>>, %arg8: memref<16x32xf32, #tpu.memory_space<vmem>>) attributes {dimension_semantics = [#tpu.dimension_semantics<parallel>, #tpu.dimension_semantics<arbitrary>], iteration_bounds = array<i64: 1, 1>, scalar_prefetch = 0 : i64, scratch_operands = 1 : i64, tpu.core_type = #tpu.core_type<tc>, window_params = [{transform_indices = @transform_0, window_bounds = array<i64: 16, 32>}, {transform_indices = @transform_1, window_bounds = array<i64: 32, 128>}, {transform_indices = @transform_2, window_bounds = array<i64: 1, 128>}, {transform_indices = @transform_3, window_bounds = array<i64: 128, 32>}, {pipeline_mode = #tpu.pipeline_mode<synchronous>, transform_indices = @transform_4, window_bounds = array<i64: 1, 32>}, {transform_indices = @transform_5, window_bounds = array<i64: 16, 32>}]} {
    %c0_i32 = arith.constant 0 : i32
    %0 = arith.cmpi eq, %arg1, %c0_i32 : i32
    %1 = arith.extui %0 : i1 to i32
    %c0_i32_0 = arith.constant 0 : i32
    %2 = arith.cmpi ne, %1, %c0_i32_0 : i32
    scf.if %2 {
      %cst_19 = arith.constant 0.000000e+00 : f32
      %31 = vector.broadcast %cst_19 : f32 to vector<16x32xf32>
      %c0_20 = arith.constant 0 : index
      %c0_21 = arith.constant 0 : index
      %32 = vector.load %arg8[%c0_20, %c0_21] : memref<16x32xf32, #tpu.memory_space<vmem>>, vector<16x32xf32>
      tpu.vector_store %arg8[%c0_20, %c0_21], %31 {strides = array<i32>} : memref<16x32xf32, #tpu.memory_space<vmem>>, vector<16x32xf32>,
    } else {
    }
    %c0 = arith.constant 0 : index
    %c0_1 = arith.constant 0 : index
    %3 = vector.load %arg2[%c0, %c0_1] : memref<16x32xbf16, #tpu.memory_space<vmem>>, vector<16x32xbf16>
    %c0_2 = arith.constant 0 : index
    %c0_3 = arith.constant 0 : index
    %4 = vector.load %arg3[%c0_2, %c0_3] : memref<32x128xbf16, #tpu.memory_space<vmem>>, vector<32x128xbf16>
    %cst = arith.constant dense<0.000000e+00> : vector<16x128xf32>
    %5 = tpu.matmul %3, %4, %cst {dimension_numbers = #tpu.dot_dimension_numbers<[1], [0], [0], [1], [0, 0, 1, 1], [], []>} : vector<16x32xbf16>, vector<32x128xbf16>, vector<16x128xf32> -> vector<16x128xf32>
    %c0_4 = arith.constant 0 : index
    %c0_5 = arith.constant 0 : index
    %6 = vector.load %arg4[%c0_4, %c0_5] : memref<1x128xf32, #tpu.memory_space<vmem>>, vector<1x128xf32>
    %7 = vector.broadcast %6 : vector<1x128xf32> to vector<16x128xf32>
    %8 = arith.addf %5, %7 : vector<16x128xf32>
    %cst_6 = arith.constant 5.000000e-01 : f32
    %9 = vector.broadcast %cst_6 : f32 to vector<16x128xf32>
    %10 = arith.mulf %9, %8 : vector<16x128xf32>
    %11 = arith.mulf %8, %8 : vector<16x128xf32>
    %12 = arith.mulf %11, %8 : vector<16x128xf32>
    %cst_7 = arith.constant 4.471500e-02 : f32
    %13 = vector.broadcast %cst_7 : f32 to vector<16x128xf32>
    %14 = arith.mulf %13, %12 : vector<16x128xf32>
    %15 = arith.addf %8, %14 : vector<16x128xf32>
    %cst_8 = arith.constant 0.797884583 : f32
    %16 = vector.broadcast %cst_8 : f32 to vector<16x128xf32>
    %17 = arith.mulf %16, %15 : vector<16x128xf32>
    %18 = math.tanh %17 : vector<16x128xf32>
    %cst_9 = arith.constant 1.000000e+00 : f32
    %19 = vector.broadcast %cst_9 : f32 to vector<16x128xf32>
    %20 = arith.addf %19, %18 : vector<16x128xf32>
    %21 = arith.mulf %10, %20 : vector<16x128xf32>
    %c0_10 = arith.constant 0 : index
    %c0_11 = arith.constant 0 : index
    %22 = vector.load %arg8[%c0_10, %c0_11] : memref<16x32xf32, #tpu.memory_space<vmem>>, vector<16x32xf32>
    %23 = arith.truncf %21 : vector<16x128xf32> to vector<16x128xbf16>
    %c0_12 = arith.constant 0 : index
    %c0_13 = arith.constant 0 : index
    %24 = vector.load %arg5[%c0_12, %c0_13] : memref<128x32xbf16, #tpu.memory_space<vmem>>, vector<128x32xbf16>
    %cst_14 = arith.constant dense<0.000000e+00> : vector<16x32xf32>
    %25 = tpu.matmul %23, %24, %cst_14 {dimension_numbers = #tpu.dot_dimension_numbers<[1], [0], [0], [1], [0, 0, 1, 1], [], []>} : vector<16x128xbf16>, vector<128x32xbf16>, vector<16x32xf32> -> vector<16x32xf32>
    %26 = arith.addf %22, %25 : vector<16x32xf32>
    %c0_15 = arith.constant 0 : index
    %c0_16 = arith.constant 0 : index
    %27 = vector.load %arg8[%c0_15, %c0_16] : memref<16x32xf32, #tpu.memory_space<vmem>>, vector<16x32xf32>
    tpu.vector_store %arg8[%c0_15, %c0_16], %26 {strides = array<i32>} : memref<16x32xf32, #tpu.memory_space<vmem>>, vector<16x32xf32>,
    %c0_i32_17 = arith.constant 0 : i32
    %28 = arith.cmpi eq, %arg1, %c0_i32_17 : i32
    %29 = arith.extui %28 : i1 to i32
    %c0_i32_18 = arith.constant 0 : i32
    %30 = arith.cmpi ne, %29, %c0_i32_18 : i32
    scf.if %30 {
      %c0_19 = arith.constant 0 : index
      %c0_20 = arith.constant 0 : index
      %31 = vector.load %arg8[%c0_19, %c0_20] : memref<16x32xf32, #tpu.memory_space<vmem>>, vector<16x32xf32>
      %c0_21 = arith.constant 0 : index
      %c0_22 = arith.constant 0 : index
      %32 = vector.load %arg6[%c0_21, %c0_22] : memref<1x32xf32, #tpu.memory_space<vmem>>, vector<1x32xf32>
      %33 = vector.broadcast %32 : vector<1x32xf32> to vector<16x32xf32>
      %34 = arith.addf %31, %33 : vector<16x32xf32>
      %c0_23 = arith.constant 0 : index
      %c0_24 = arith.constant 0 : index
      %35 = vector.load %arg7[%c0_23, %c0_24] : memref<16x32xf32, #tpu.memory_space<vmem>>, vector<16x32xf32>
      tpu.vector_store %arg7[%c0_23, %c0_24], %34 {strides = array<i32>} : memref<16x32xf32, #tpu.memory_space<vmem>>, vector<16x32xf32>,
    } else {
    }
    return
  }
  func.func @transform_0(%arg0: i32, %arg1: i32) -> (i32, i32) {
    %c0_i32 = arith.constant 0 : i32
    %c0_i32_0 = arith.constant 0 : i32
    return %arg0, %c0_i32 : i32, i32
  }
  func.func @transform_1(%arg0: i32, %arg1: i32) -> (i32, i32) {
    %c0_i32 = arith.constant 0 : i32
    %c0_i32_0 = arith.constant 0 : i32
    return %c0_i32, %arg1 : i32, i32
  }
  func.func @transform_2(%arg0: i32, %arg1: i32) -> (i32, i32) {
    %c0_i32 = arith.constant 0 : i32
    %c0_i32_0 = arith.constant 0 : i32
    return %c0_i32, %arg1 : i32, i32
  }
  func.func @transform_3(%arg0: i32, %arg1: i32) -> (i32, i32) {
    %c0_i32 = arith.constant 0 : i32
    %c0_i32_0 = arith.constant 0 : i32
    return %arg1, %c0_i32 : i32, i32
  }
  func.func @transform_4(%arg0: i32, %arg1: i32) -> (i32, i32) {
    %c0_i32 = arith.constant 0 : i32
    %c0_i32_0 = arith.constant 0 : i32
    %c0_i32_1 = arith.constant 0 : i32
    return %c0_i32, %c0_i32_0 : i32, i32
  }
  func.func @transform_5(%arg0: i32, %arg1: i32) -> (i32, i32) {
    %c0_i32 = arith.constant 0 : i32
    %c0_i32_0 = arith.constant 0 : i32
    return %arg0, %c0_i32 : i32, i32
  }
}

</mosaic_0001>

<bundles_post_ra>
// kernel: tpu_custom_call.1
= control target key start
LH: loop header
LB: loop body
LE: loop exit
PB: predicated region body
PF: predicated region fallthrough
CT: control target
= control target key end

     0   :  { %v364_v1 = vmov 0.0   ;;  %vm365_vm0 = vmmov 0   ;;  %vm26_vm1 = vcmask 261120   ;;  %s457_s0 = inlined_call_operand.vmem [shape: bf16[16,32], index: 0, kind: input, shape index: {}]   ;;  %s458_s1 = inlined_call_operand.vmem [shape: bf16[32,128], index: 1, kind: input, shape index: {}]   ;;  %s459_s2 = inlined_call_operand.vmem [shape: f32[1,128], index: 2, kind: input, shape index: {}]   ;;  %s460_s3 = inlined_call_operand.vmem [shape: bf16[128,32], index: 3, kind: input, shape index: {}]   ;;  %s461_s4 = inlined_call_operand.vmem [shape: f32[1,32], index: 4, kind: input, shape index: {}]   ;;  %s462_s5 = inlined_call_operand.hbm [shape: f32[16,32], index: 5, kind: output, shape index: {}]  }
   0x1   :  { %v325_v0 = vld [vmem:[%s458_s1] sm:$0xff]   ;;  %292 = vmatprep.subr.bf16.mxu0 %v364_v1  ;;  %300 = vmatprep.subr.bf16.mxu1 %v364_v1  ;;  %v326_v2 = vld [vmem:[%s458_s1 + $0x8] sm:$0xff]   ;;  %27 = vst.msk [vmem:[#allocation2] sm:$0xff] %vm26_vm1, %v364_v1  ;;  %28 = vst.msk [vmem:[#allocation2 + $0x8] sm:$0xff] %vm26_vm1, %v364_v1 }
   0x2   :  { %293 = vmatpush3.bf16.msra.mxu0 %v325_v0  ;;  %296 = vmatprep.mubr.msk.bf16.mxu0 %vm365_vm0, %v364_v1  ;;  %v327_v3 = vld [vmem:[%s457_s0] sm:$0xff]  }
   0x3   :  { %294 = vmatprep.subr.bf16.mxu0 %v364_v1  ;;  %316 = vmatprep.mubr.msk.bf16.mxu1 %vm365_vm0, %v364_v1 }
   0x6   :  { %295 = vmatpush3.bf16.msra.mxu0 %v326_v2 }
   0x7   :  { %10 = vsyncpa [#allocation4], 0  ;;  %v328_v4 = vld [vmem:[%s460_s3] sm:$0xff]   ;;  %v329_v5 = vld [vmem:[%s460_s3 + $0x8] sm:$0xff]   ;;  %s366_s15 = smov [#allocation3]  }
   0x8   :  { %301 = vmatpush3.bf16.msra.mxu1 %v328_v4  ;;  %v330_v6 = vld [vmem:[%s460_s3 + $0x10] sm:$0xff]   ;;  %v331_v7 = vld [vmem:[%s460_s3 + $0x18] sm:$0xff]   ;;  %v332_v8 = vld [vmem:[%s460_s3 + $0x20] sm:$0xff]   ;;  %s255_s16 = sshll.u32 %s366_s15, 4  ;;  %s256_s16 = int_to_ptr.vmem [resolvable:$true] %s255_s16 }
   0x9   :  { %297 = vmatmul.mubr.msk.bf16.vlgmr.msra.gmra.mrb[0].mxu0 %vm26_vm1, %v327_v3  ;;  %302 = vmatprep.subr.bf16.mxu1 %v364_v1  ;;  %v333_v9 = vld [vmem:[%s460_s3 + $0x28] sm:$0xff]   ;;  %v334_v10 = vld [vmem:[%s460_s3 + $0x30] sm:$0xff]   ;;  %v335_v11 = vld [vmem:[%s460_s3 + $0x38] sm:$0xff]   ;;  %s340_s17 = scalar_lea.vmem %s256_s16, 256  ;;  %p345_p1 = scmp.lt.s32.totalorder %s256_s16, %s256_s16 }
   0xa   :  { %v266_v12 = vld [vmem:[%s459_s2] ss:$0 sm:$0xff]  ;;  %v123_v40 = vld [vmem:[#allocation2 + $0x8] sm:$0xff]  ;;  %p341_p0 = scmp.ne.s32.totalorder %s256_s16, %s340_s17  ;;  %p346_p2 = scmp.lt.s32.totalorder %s340_s17, %s340_s17 }
   0xb   :  { %v122_v38 = vld [vmem:[#allocation2] sm:$0xff] }
   0xc   :  { %303 = vmatpush3.bf16.msra.mxu1 %v329_v5  ;;  %v279_v46 = vld [vmem:[%s461_s4] ss:$0 sm:$0xff]  ;;  %p347_p3 = por %p346_p2, %p345_p1 }
   0xd   :  { %304 = vmatprep.subr.bf16.mxu1 %v364_v1 }
   0xe   :  { %p348_p4 = pnand %p347_p3, %p341_p0 }
  0x10   :  { %305 = vmatpush3.bf16.msra.mxu1 %v330_v6 }
  0x11   :  { %306 = vmatprep.subr.bf16.mxu1 %v364_v1 }
  0x14   :  { %307 = vmatpush3.bf16.msra.mxu1 %v331_v7 }
  0x15   :  { %308 = vmatprep.subr.bf16.mxu1 %v364_v1 }
  0x18   :  { %309 = vmatpush3.bf16.msra.mxu1 %v332_v8 }
  0x19   :  { %310 = vmatprep.subr.bf16.mxu1 %v364_v1 }
  0x1c   :  { %311 = vmatpush3.bf16.msra.mxu1 %v333_v9 }
  0x1d   :  { %312 = vmatprep.subr.bf16.mxu1 %v364_v1 }
  0x20   :  { %313 = vmatpush3.bf16.msra.mxu1 %v334_v10 }
  0x21   :  { %314 = vmatprep.subr.bf16.mxu1 %v364_v1 }
  0x24   :  { %315 = vmatpush3.bf16.msra.mxu1 %v335_v11 }
  0xdc   :  { %v97_v13 = vpop.f32.mrb[0].mxu0 }
  0xdd   :  { %v98_v14 = vadd.f32 %v266_v12, %v97_v13  ;;  %v298_v15 = vpop.f32.mrb[1].mxu0 }
  0xde   :  { %v100_v16 = vpop.f32.mrb[2].mxu0 }
  0xdf   :  { %v106_v17 = vmul.f32 %v98_v14, %v98_v14  ;;  %v101_v18 = vadd.f32 %v266_v12, %v100_v16  ;;  %v299_v19 = vpop.f32.mrb[3].mxu0  ;;  %v104_v32 = vmul.f32 0.5, %v98_v14 }
  0xe1   :  { %v108_v20 = vmul.f32 %v106_v17, %v98_v14  ;;  %v107_v21 = vmul.f32 %v101_v18, %v101_v18  ;;  %v105_v33 = vmul.f32 0.5, %v101_v18 }
  0xe3   :  { %v110_v22 = vmul.f32 0.044715, %v108_v20  ;;  %v109_v23 = vmul.f32 %v107_v21, %v101_v18 }
  0xe5   :  { %v112_v24 = vadd.f32 %v110_v22, %v98_v14  ;;  %v111_v25 = vmul.f32 0.044715, %v109_v23 }
  0xe7   :  { %v114_v26 = vmul.f32 0.7978846, %v112_v24  ;;  %v113_v27 = vadd.f32 %v111_v25, %v101_v18 }
  0xe9   :  { %336 = vtanh.f32 %v114_v26  ;;  %v115_v28 = vmul.f32 0.7978846, %v113_v27 }
  0xeb   :  { %338 = vtanh.f32 %v115_v28 }
  0xf3   :  { %v337_v29 = vpop.eup %336 }
  0xf4   :  { %v118_v30 = vadd.f32 1.0, %v337_v29 }
  0xf5   :  { %v339_v31 = vpop.eup %338 }
  0xf6   :  { %v119_v34 = vadd.f32 1.0, %v339_v31  ;;  %v120_v35 = vmul.f32 %v118_v30, %v104_v32 }
  0xf8   :  { %v121_v36 = vmul.f32 %v119_v34, %v105_v33 }
  0xfa   :  { %v124_v37 = vpack.c.bf16 %v121_v36, %v120_v35 }
  0xfc   :  { %317 = vmatmul.mubr.bf16.vlgmr.msra.gmra.mrb[0].mxu1 %v124_v37 }
 0x1cf   :  { %v223_v39 = vpop.f32.mrb[0].mxu1 }
 0x1d0   :  { %v230_v41 = vadd.f32 %v223_v39, %v122_v38  ;;  %v318_v42 = vpop.f32.mrb[1].mxu1 }
 0x1d1   :  { %v226_v43 = vpop.f32.mrb[2].mxu1 }
 0x1d2   :  { %232 = vst.msk [vmem:[#allocation2] sm:$0xff] %vm26_vm1, %v230_v41  ;;  %v231_v44 = vadd.f32 %v226_v43, %v123_v40  ;;  %v319_v45 = vpop.f32.mrb[3].mxu1 }
 0x1d4   :  { %233 = vst.msk [vmem:[#allocation2 + $0x8] sm:$0xff] %vm26_vm1, %v231_v44 }
 0x1d9   :  { %v237_v47 = vld [vmem:[#allocation2] sm:$0xff] }
 0x1da   :  { %v246_v48 = vadd.f32 %v279_v46, %v237_v47 }
 0x1db   :  { %v238_v49 = vld [vmem:[#allocation2 + $0x8] sm:$0xff] }
 0x1dc   :  { %v247_v50 = vadd.f32 %v279_v46, %v238_v49  ;;  %248 = vst.msk [vmem:[#allocation3] sm:$0xff] %vm26_vm1, %v246_v48 }
 0x1de   :  { %249 = vst.msk [vmem:[#allocation3 + $0x8] sm:$0xff] %vm26_vm1, %v247_v50 }
 0x1df   :  { %351 = shalt.err (!%p348_p4)
}
 0x1e0   :  { %s352_s19 = scalar_lea.hbm %s462_s5, 256 }
 0x1e1   :  { %p353_p5 = scmp.ne.s32.totalorder %s462_s5, %s352_s19  ;;  %p356_p6 = scmp.lt.u32.totalorder %s352_s19, %s462_s5 }
 0x1e3   :  { %p358_p7 = pnand %p356_p6, %p353_p5 }
 0x1e5   :  { %361 = shalt.err (!%p358_p7)
}
 0x1e6   :  { %s367_s24 = smov 128   ;;  %s368_s25 = smov 8  }
 0x1e7   :  { %261 = dma.vmem_to_hbm [thread:$0]  %s256_s16, 256, %s462_s5, [#allocation4], %s367_s24, %s367_s24, %s368_s25  }
 0x1e8   :  { %362 = dma.done.wait [#allocation4], 256  }
 0x1e9   :  { %363 = vsyncadd [#allocation4], 4294967040 }
 0x1ea   :  { %265 = vsyncpa [#allocation4], 1 }

</bundles_post_ra>
